<compile_context>
chip_gen: v6e
topology: v6e:2x2x1
jax: 0.10.0
libtpu: 0.0.40
codegen_flags: <defaults>
</compile_context>

<pallas_src>
import math
import numpy as np
import jax
import jax.numpy as jnp
from jax.experimental import pallas as pl
from jax.experimental.pallas import tpu as pltpu

TILE = 256  # node / MXU-aligned tile (v6e/v7x MXU is 2 x 256^2)


def _round_up(x: int, m: int) -> int:
    return ((x + m - 1) // m) * m


def _largest_tile(total: int, cap: int, step: int = 256) -> int:
    """Largest multiple of `step` that divides `total` and is <= cap."""
    best = step
    t = step
    while t <= min(total, cap):
        if total % t == 0:
            best = t
        t += step
    return min(best, total)


def _vmem_limit_bytes() -> int:
    """Portable scoped-VMEM budget: ~half of physical, clamped to [32, 64] MiB."""
    try:
        info = pltpu.get_tpu_info()
        cap = int(getattr(info, "vmem_capacity_bytes", 64 * 1024 * 1024))
    except Exception:  # pragma: no cover - defensive fallback
        cap = 64 * 1024 * 1024
    return min(max(cap // 2, 32 * 1024 * 1024), 64 * 1024 * 1024)


# --------------------------------------------------------------------------- #
# Pass B: dense tiled matmul (f32 accumulation on the MXU)
# --------------------------------------------------------------------------- #
def _matmul_kernel(a_ref, b_ref, o_ref, acc_ref):
    @pl.when(pl.program_id(2) == 0)
    def _init():
        acc_ref[...] = jnp.zeros_like(acc_ref)

    acc_ref[...] += jnp.dot(a_ref[...], b_ref[...],
                            preferred_element_type=jnp.float32)

    @pl.when(pl.program_id(2) == pl.num_programs(2) - 1)
    def _store():
        o_ref[...] = acc_ref[...].astype(o_ref.dtype)


def _dense_matmul(a, b, out_dtype, *, vmem_limit):
    M, K = a.shape
    K2, N = b.shape
    assert K == K2, (a.shape, b.shape)
    tm = TILE
    tn = _largest_tile(N, 1024)
    tk = _largest_tile(K, 1024)
    grid = (M // tm, N // tn, K // tk)
    return pl.pallas_call(
        _matmul_kernel,
        out_shape=jax.ShapeDtypeStruct((M, N), out_dtype),
        grid_spec=pltpu.PrefetchScalarGridSpec(
            num_scalar_prefetch=0,
            grid=grid,
            in_specs=[
                pl.BlockSpec((tm, tk), lambda i, j, k: (i, k)),
                pl.BlockSpec((tk, tn), lambda i, j, k: (k, j)),
            ],
            out_specs=pl.BlockSpec((tm, tn), lambda i, j, k: (i, j)),
            scratch_shapes=[pltpu.VMEM((tm, tn), jnp.float32)],
        ),
        compiler_params=pltpu.CompilerParams(
            dimension_semantics=("parallel", "parallel", "arbitrary"),
            vmem_limit_bytes=vmem_limit),
    )(a, b)


# --------------------------------------------------------------------------- #
# Pass A: block-sparse adjacency SpMM  (adj @ feat), block-CSR schedule
# --------------------------------------------------------------------------- #
def _spmm_kernel(cols_ref, counts_ref, adj_ref, feat_ref, o_ref, acc_ref):
    i = pl.program_id(0)
    k = pl.program_id(2)

    @pl.when(k == 0)
    def _init():
        acc_ref[...] = jnp.zeros_like(acc_ref)

    # Only real (non-padded) schedule entries contribute; padded entries repeat
    # the previous block index so they also cost no DMA.
    @pl.when(k < counts_ref[i])
    def _accumulate():
        acc_ref[...] += jnp.dot(adj_ref[...], feat_ref[...],
                                preferred_element_type=jnp.float32)

    @pl.when(k == pl.num_programs(2) - 1)
    def _store():
        o_ref[...] = acc_ref[...].astype(o_ref.dtype)


def _blocksparse_spmm(adj_p, feat_p, cols, counts, out_dtype, *,
                      tile_feat, vmem_limit):
    n_pad = adj_p.shape[0]
    f_pad = feat_p.shape[1]
    nb = n_pad // TILE
    max_blocks = cols.shape[1]
    grid = (nb, f_pad // tile_feat, max_blocks)
    return pl.pallas_call(
        _spmm_kernel,
        out_shape=jax.ShapeDtypeStruct((n_pad, f_pad), out_dtype),
        grid_spec=pltpu.PrefetchScalarGridSpec(
            num_scalar_prefetch=2,
            grid=grid,
            in_specs=[
                # adjacency tile: row-tile i, column block from the schedule
                pl.BlockSpec((TILE, TILE),
                             lambda i, j, k, c, n: (i, c[i, k])),
                # feature tile matching that column block, feature-column j
                pl.BlockSpec((TILE, tile_feat),
                             lambda i, j, k, c, n: (c[i, k], j)),
            ],
            out_specs=pl.BlockSpec((TILE, tile_feat),
                                   lambda i, j, k, c, n: (i, j)),
            scratch_shapes=[pltpu.VMEM((TILE, tile_feat), jnp.float32)],
        ),
        compiler_params=pltpu.CompilerParams(
            dimension_semantics=("parallel", "parallel", "arbitrary"),
            vmem_limit_bytes=vmem_limit),
    )(cols, counts, adj_p, feat_p)


def _build_block_schedule(adj, n_pad):
    """Block-CSR schedule over TILE x TILE adjacency blocks.

    Only the nb x nb block-nonzero boolean is pulled to host (no O(N^2) host
    densification).  Padded slots repeat the last valid block index so the
    Pallas pipeline skips their DMAs; compute is guarded by `counts`.
    """
    N = adj.shape[0]
    nb = n_pad // TILE
    nz = jnp.pad(adj != 0, ((0, n_pad - N), (0, n_pad - N)))
    blk_nz = np.asarray(nz.reshape(nb, TILE, nb, TILE).any(axis=(1, 3)))
    counts = blk_nz.sum(axis=1).astype(np.int32)
    max_blocks = max(int(counts.max()), 1)
    cols = np.zeros((nb, max_blocks), np.int32)
    for r in range(nb):
        nzc = np.nonzero(blk_nz[r])[0].astype(np.int32)
        cols[r, :nzc.size] = nzc
        cols[r, nzc.size:] = nzc[-1] if nzc.size else 0
    return jnp.asarray(cols), jnp.asarray(counts)


# --------------------------------------------------------------------------- #
# Forward
# --------------------------------------------------------------------------- #
def gcn_forward(x, adj, weight, *, compute_dtype=jnp.bfloat16):
    """out = adj @ (x @ weight), two-pass block-sparse Pallas TPU implementation.

    Numerics: inputs and the single intermediate stream in bf16, accumulation
    is f32 on the MXU (error vs an all-f32 reference is ~1e-2 scale).
    """
    N, fan_in = x.shape
    fi_w, fan_out = weight.shape
    assert fi_w == fan_in, (x.shape, weight.shape)
    assert adj.shape == (N, N), adj.shape

    n_pad = _round_up(N, TILE)
    fan_in_p = _round_up(fan_in, TILE)
    fan_out_p = _round_up(fan_out, TILE)

    vmem_limit = _vmem_limit_bytes()
    # Feature-tile cap from the VMEM budget (double-buffered adj + feat + out,
    # plus the f32 accumulator), leaving ~40% headroom for Mosaic internals.
    fixed = 2 * TILE * TILE * 2                 # adj tile, double-buffered bf16
    per_col = TILE * (2 * 2 + 2 * 4 + 4)        # feat(bf16 x2) + out(f32 x2) + acc(f32)
    feat_cap = max(256, ((int(vmem_limit * 0.6) - fixed) // per_col) // 256 * 256)

    adj_p = jnp.pad(adj.astype(compute_dtype),
                    ((0, n_pad - N), (0, n_pad - N)))
    cols, counts = _build_block_schedule(adj, n_pad)

    if fan_in <= fan_out:
        # Aggregate first: the N^2 matmul carries the smaller dim (fan_in).
        x_p = jnp.pad(x.astype(compute_dtype),
                      ((0, n_pad - N), (0, fan_in_p - fan_in)))
        tile_feat = _largest_tile(fan_in_p, feat_cap)
        agg = _blocksparse_spmm(adj_p, x_p, cols, counts, compute_dtype,
                                tile_feat=tile_feat, vmem_limit=vmem_limit)
        w_p = jnp.pad(weight.astype(compute_dtype),
                      ((0, fan_in_p - fan_in), (0, fan_out_p - fan_out)))
        out_p = _dense_matmul(agg, w_p, jnp.float32, vmem_limit=vmem_limit)
    else:
        # Transform first: support = x @ W, then block-sparse aggregate.
        x_p = jnp.pad(x.astype(compute_dtype),
                      ((0, n_pad - N), (0, fan_in_p - fan_in)))
        w_p = jnp.pad(weight.astype(compute_dtype),
                      ((0, fan_in_p - fan_in), (0, fan_out_p - fan_out)))
        support = _dense_matmul(x_p, w_p, compute_dtype, vmem_limit=vmem_limit)
        tile_feat = _largest_tile(fan_out_p, feat_cap)
        out_p = _blocksparse_spmm(adj_p, support, cols, counts, jnp.float32,
                                  tile_feat=tile_feat, vmem_limit=vmem_limit)

    return out_p[:N, :fan_out]


class GraphConvolutionLayer:
    """JAX/Pallas port of the PyTorch GCN layer: out = adj @ (x @ W)."""

    def __init__(self, fan_in, fan_out, key):
        self.fan_in = fan_in
        self.fan_out = fan_out
        std_dev = 1.0 / math.sqrt(fan_out)
        # Matches torch's uniform_(-std, std) init (deterministic via PRNGKey).
        self.weight = jax.random.uniform(
            key, (fan_in, fan_out), dtype=jnp.float32,
            minval=-std_dev, maxval=std_dev)

    def __call__(self, x, adj_mtx):
        return gcn_forward(x, adj_mtx, self.weight)


if __name__ == "__main__":
    key = jax.random.PRNGKey(0)
    k_w, k_x, k_a = jax.random.split(key, 3)

    num_nodes, fan_in, fan_out = 16, 32, 64

    layer = GraphConvolutionLayer(fan_in, fan_out, k_w)

    # Node features.
    x = jax.random.normal(k_x, (num_nodes, fan_in), dtype=jnp.float32)

    # Deterministic symmetric-normalized dense adjacency A_hat = D^-1/2 (A+I) D^-1/2.
    a_rand = jax.random.uniform(k_a, (num_nodes, num_nodes))
    a_bin = (a_rand < 0.2).astype(jnp.float32)
    a_sym = jnp.clip(a_bin + a_bin.T, 0.0, 1.0) + jnp.eye(num_nodes, dtype=jnp.float32)
    deg = jnp.sum(a_sym, axis=1)
    d_inv_sqrt = 1.0 / jnp.sqrt(deg)
    adj = a_sym * d_inv_sqrt[:, None] * d_inv_sqrt[None, :]

    out = layer(x, adj)
    out = jax.block_until_ready(out)

    # Reference check against plain f32 JAX (loose tolerance: bf16 input / one
    # bf16 intermediate round-trip, f32 accumulation inside the kernels).
    ref = adj @ (x @ layer.weight)
    assert out.shape == (num_nodes, fan_out)
    max_err = float(jnp.max(jnp.abs(out - ref)))
    assert jnp.allclose(out, ref, atol=5e-2, rtol=5e-2), max_err

    print("KERNEL_OK")
</pallas_src>

<mosaic_0001>
module attributes {stable_mosaic.version = 11 : i64} {
  func.func @_spmm_kernel(%arg0: i32, %arg1: i32, %arg2: i32, %arg3: memref<1x1xi32, #tpu.memory_space<smem>>, %arg4: memref<1xi32, #tpu.memory_space<smem>>, %arg5: memref<256x256xbf16, #tpu.memory_space<vmem>>, %arg6: memref<256x256xbf16, #tpu.memory_space<vmem>>, %arg7: memref<256x256xbf16, #tpu.memory_space<vmem>>, %arg8: memref<256x256xf32, #tpu.memory_space<vmem>>) attributes {dimension_semantics = [#tpu.dimension_semantics<parallel>, #tpu.dimension_semantics<parallel>, #tpu.dimension_semantics<arbitrary>], iteration_bounds = array<i64: 1, 1, 1>, scalar_prefetch = 2 : i64, scratch_operands = 1 : i64, tpu.core_type = #tpu.core_type<tc>, window_params = [{transform_indices = @transform_0, window_bounds = array<i64: 256, 256>}, {transform_indices = @transform_1, window_bounds = array<i64: 256, 256>}, {transform_indices = @transform_2, window_bounds = array<i64: 256, 256>}]} {
    %c0_i32 = arith.constant 0 : i32
    %0 = arith.cmpi eq, %arg2, %c0_i32 : i32
    %1 = arith.extui %0 : i1 to i32
    %c0_i32_0 = arith.constant 0 : i32
    %2 = arith.cmpi ne, %1, %c0_i32_0 : i32
    scf.if %2 {
      %cst = arith.constant 0.000000e+00 : f32
      %11 = vector.broadcast %cst : f32 to vector<256x256xf32>
      %c0 = arith.constant 0 : index
      %c0_4 = arith.constant 0 : index
      %12 = vector.load %arg8[%c0, %c0_4] : memref<256x256xf32, #tpu.memory_space<vmem>>, vector<256x256xf32>
      tpu.vector_store %arg8[%c0, %c0_4], %11 {strides = array<i32>} : memref<256x256xf32, #tpu.memory_space<vmem>>, vector<256x256xf32>,
    } else {
    }
    %3 = arith.index_cast %arg0 : i32 to index
    %4 = memref.load %arg4[%3] : memref<1xi32, #tpu.memory_space<smem>>
    %5 = arith.cmpi slt, %arg2, %4 : i32
    %6 = arith.extui %5 : i1 to i32
    %c0_i32_1 = arith.constant 0 : i32
    %7 = arith.cmpi ne, %6, %c0_i32_1 : i32
    scf.if %7 {
      %c0 = arith.constant 0 : index
      %c0_4 = arith.constant 0 : index
      %11 = vector.load %arg8[%c0, %c0_4] : memref<256x256xf32, #tpu.memory_space<vmem>>, vector<256x256xf32>
      %c0_5 = arith.constant 0 : index
      %c0_6 = arith.constant 0 : index
      %12 = vector.load %arg5[%c0_5, %c0_6] : memref<256x256xbf16, #tpu.memory_space<vmem>>, vector<256x256xbf16>
      %c0_7 = arith.constant 0 : index
      %c0_8 = arith.constant 0 : index
      %13 = vector.load %arg6[%c0_7, %c0_8] : memref<256x256xbf16, #tpu.memory_space<vmem>>, vector<256x256xbf16>
      %cst = arith.constant dense<0.000000e+00> : vector<256x256xf32>
      %14 = tpu.matmul %12, %13, %cst {dimension_numbers = #tpu.dot_dimension_numbers<[1], [0], [0], [1], [0, 0, 1, 1], [], []>} : vector<256x256xbf16>, vector<256x256xbf16>, vector<256x256xf32> -> vector<256x256xf32>
      %15 = arith.addf %11, %14 : vector<256x256xf32>
      %c0_9 = arith.constant 0 : index
      %c0_10 = arith.constant 0 : index
      %16 = vector.load %arg8[%c0_9, %c0_10] : memref<256x256xf32, #tpu.memory_space<vmem>>, vector<256x256xf32>
      tpu.vector_store %arg8[%c0_9, %c0_10], %15 {strides = array<i32>} : memref<256x256xf32, #tpu.memory_space<vmem>>, vector<256x256xf32>,
    } else {
    }
    %c0_i32_2 = arith.constant 0 : i32
    %8 = arith.cmpi eq, %arg2, %c0_i32_2 : i32
    %9 = arith.extui %8 : i1 to i32
    %c0_i32_3 = arith.constant 0 : i32
    %10 = arith.cmpi ne, %9, %c0_i32_3 : i32
    scf.if %10 {
      %c0 = arith.constant 0 : index
      %c0_4 = arith.constant 0 : index
      %11 = vector.load %arg8[%c0, %c0_4] : memref<256x256xf32, #tpu.memory_space<vmem>>, vector<256x256xf32>
      %12 = arith.truncf %11 : vector<256x256xf32> to vector<256x256xbf16>
      %c0_5 = arith.constant 0 : index
      %c0_6 = arith.constant 0 : index
      %13 = vector.load %arg7[%c0_5, %c0_6] : memref<256x256xbf16, #tpu.memory_space<vmem>>, vector<256x256xbf16>
      tpu.vector_store %arg7[%c0_5, %c0_6], %12 {strides = array<i32>} : memref<256x256xbf16, #tpu.memory_space<vmem>>, vector<256x256xbf16>,
    } else {
    }
    return
  }
  func.func @transform_0(%arg0: i32, %arg1: i32, %arg2: i32, %arg3: memref<1x1xi32, #tpu.memory_space<smem>>, %arg4: memref<1xi32, #tpu.memory_space<smem>>) -> (i32, i32) {
    %0 = arith.index_cast %arg0 : i32 to index
    %1 = arith.index_cast %arg2 : i32 to index
    %2 = memref.load %arg3[%0, %1] : memref<1x1xi32, #tpu.memory_space<smem>>
    %c0_i32 = arith.constant 0 : i32
    return %arg0, %2 : i32, i32
  }
  func.func @transform_1(%arg0: i32, %arg1: i32, %arg2: i32, %arg3: memref<1x1xi32, #tpu.memory_space<smem>>, %arg4: memref<1xi32, #tpu.memory_space<smem>>) -> (i32, i32) {
    %0 = arith.index_cast %arg0 : i32 to index
    %1 = arith.index_cast %arg2 : i32 to index
    %2 = memref.load %arg3[%0, %1] : memref<1x1xi32, #tpu.memory_space<smem>>
    %c0_i32 = arith.constant 0 : i32
    return %2, %arg1 : i32, i32
  }
  func.func @transform_2(%arg0: i32, %arg1: i32, %arg2: i32, %arg3: memref<1x1xi32, #tpu.memory_space<smem>>, %arg4: memref<1xi32, #tpu.memory_space<smem>>) -> (i32, i32) {
    %c0_i32 = arith.constant 0 : i32
    return %arg0, %arg1 : i32, i32
  }
}

</mosaic_0001>

<bundles_post_ra>
// kernel: tpu_custom_call.1
= control target key start
LH: loop header
LB: loop body
LE: loop exit
PB: predicated region body
PF: predicated region fallthrough
CT: control target
= control target key end

     0   :  { %11 = vsyncpa [#allocation7], 0  ;;  %s1700_s0 = inlined_call_operand.<no memory space> [shape: s32[1,1], index: 0, kind: input, shape index: {}]   ;;  %s1701_s1 = inlined_call_operand.<no memory space> [shape: s32[1], index: 1, kind: input, shape index: {}]   ;;  %s1702_s2 = inlined_call_operand.hbm [shape: bf16[256,256], index: 2, kind: input, shape index: {}]   ;;  %s1703_s3 = inlined_call_operand.hbm [shape: bf16[256,256], index: 3, kind: input, shape index: {}]   ;;  %s1704_s4 = inlined_call_operand.hbm [shape: bf16[256,256], index: 4, kind: output, shape index: {}]  }
   0x1   :  { %12 = vsyncpa [#allocation10], 0 }
   0x2   :  { %13 = vsyncpa [#allocation8], 0  ;;  %s1327_s17 = sshll.u32 %s1700_s0, 7  ;;  %s1566_s21 = smov [#allocation6]  }
   0x3   :  { %s25_s20 = scalar_lea.hbm %s1702_s2, %s1327_s17  ;;  %s26_s22 = sshll.u32 %s1566_s21, 4  ;;  %s27_s22 = int_to_ptr.vmem [resolvable:$true] %s26_s22 }
   0x4   :  { %s1329_s25 = sshll.u32 %s1700_s0, 12  ;;  %s1496_s26 = scalar_lea.hbm %s25_s20, 4096 }
   0x5   :  { %p1497_p0 = scmp.ne.s32.totalorder %s25_s20, %s1496_s26  ;;  %s1498_s29 = scalar_lea.hbm %s1702_s2, 4096 }
   0x6   :  { %p1499_p1 = scmp.lt.s32.totalorder %s25_s20, %s1702_s2  ;;  %p1500_p2 = scmp.lt.s32.totalorder %s1498_s29, %s1496_s26 }
   0x8   :  { %p1501_p3 = por %p1500_p2, %p1499_p1 }
   0xa   :  { %p1502_p4 = pnand %p1501_p3, %p1497_p0 }
   0xc   :  { %1505 = shalt.err (!%p1502_p4)
}
   0xd   :  { %s1506_s6 = scalar_lea.vmem %s27_s22, 4096  ;;  %p1511_p6 = scmp.lt.s32.totalorder %s27_s22, %s27_s22 }
   0xe   :  { %p1507_p5 = scmp.ne.s32.totalorder %s27_s22, %s1506_s6  ;;  %p1512_p7 = scmp.lt.s32.totalorder %s1506_s6, %s1506_s6 }
  0x10   :  { %p1513_p8 = por %p1512_p7, %p1511_p6 }
  0x12   :  { %p1514_p9 = pnand %p1513_p8, %p1507_p5 }
  0x14   :  { %1517 = shalt.err (!%p1514_p9)
}
  0x15   :  { %s1567_s0 = smov 128   ;;  %s1568_s7 = smov 8  }
  0x16   :  { %32 = dma.hbm_to_vmem [thread:$0]  %s25_s20, 4096, %s27_s22, [#allocation7], %s1567_s0, %s1567_s0, %s1568_s7  }
  0x17   :  { %s45_s2 = scalar_lea.hbm %s1703_s3, %s1329_s25  ;;  %s1569_s10 = smov [#allocation9]  }
  0x18   :  { %s46_s11 = sshll.u32 %s1569_s10, 4  ;;  %s1518_s12 = scalar_lea.hbm %s45_s2, 4096  ;;  %s47_s11 = int_to_ptr.vmem [resolvable:$true] %s46_s11 }
  0x19   :  { %p1519_p10 = scmp.ne.s32.totalorder %s45_s2, %s1518_s12  ;;  %s1520_s15 = scalar_lea.hbm %s1703_s3, 4096 }
  0x1a   :  { %p1521_p11 = scmp.lt.s32.totalorder %s45_s2, %s1703_s3  ;;  %p1522_p12 = scmp.lt.s32.totalorder %s1520_s15, %s1518_s12 }
  0x1c   :  { %p1523_p13 = por %p1522_p12, %p1521_p11 }
  0x1e   :  { %p1524_p0 = pnand %p1523_p13, %p1519_p10 }
  0x20   :  { %1527 = shalt.err (!%p1524_p0)
}
  0x21   :  { %s1528_s18 = scalar_lea.vmem %s47_s11, 4096  ;;  %p1533_p2 = scmp.lt.s32.totalorder %s47_s11, %s47_s11 }
  0x22   :  { %p1529_p1 = scmp.ne.s32.totalorder %s47_s11, %s1528_s18  ;;  %p1534_p3 = scmp.lt.s32.totalorder %s1528_s18, %s1528_s18 }
  0x24   :  { %p1535_p4 = por %p1534_p3, %p1533_p2 }
  0x26   :  { %p1536_p5 = pnand %p1535_p4, %p1529_p1 }
  0x28   :  { %1539 = shalt.err (!%p1536_p5)
}
  0x29   :  { %52 = dma.hbm_to_vmem [thread:$0]  %s45_s2, 4096, %s47_s11, [#allocation10], %s1567_s0, %s1567_s0, %s1568_s7  }
  0x2a   :  { %1560 = dma.done.wait [#allocation7], 4096  }
  0x2b   :  { %1561 = vsyncadd [#allocation7], 4294963200 }
  0x2c   :  { %1562 = dma.done.wait [#allocation10], 4096  }
  0x2d   :  { %1563 = vsyncadd [#allocation10], 4294963200  ;;  %v1570_v0 = vmov 0.0   ;;  %p1230_p6 = scmp.le.s32.totalorder %s1701_s1, 0 }
  0x2e   :  { %73 = vst [vmem:[#allocation2 + $0xb0] sm:$0xff] %v1570_v0  ;;  %74 = vst [vmem:[#allocation2 + $0x1b0] sm:$0xff] %v1570_v0 }
  0x2f   :  { %75 = vst [vmem:[#allocation2 + $0xd8] sm:$0xff] %v1570_v0  ;;  %76 = vst [vmem:[#allocation2 + $0x18] sm:$0xff] %v1570_v0 }
  0x30   :  { %77 = vst [vmem:[#allocation2 + $0x50] sm:$0xff] %v1570_v0  ;;  %78 = vst [vmem:[#allocation2 + $0x168] sm:$0xff] %v1570_v0 }
  0x31   :  { %79 = vst [vmem:[#allocation2 + $0x130] sm:$0xff] %v1570_v0  ;;  %80 = vst [vmem:[#allocation2 + $0x48] sm:$0xff] %v1570_v0 }
  0x32   :  { %81 = vst [vmem:[#allocation2 + $0x180] sm:$0xff] %v1570_v0  ;;  %82 = vst [vmem:[#allocation2 + $0x110] sm:$0xff] %v1570_v0 }
  0x33   :  { %83 = vst [vmem:[#allocation2 + $0x118] sm:$0xff] %v1570_v0  ;;  %84 = vst [vmem:[#allocation2 + $0x98] sm:$0xff] %v1570_v0 }
  0x34   :  { %85 = vst [vmem:[#allocation2 + $0x120] sm:$0xff] %v1570_v0  ;;  %86 = vst [vmem:[#allocation2 + $0x150] sm:$0xff] %v1570_v0 }
  0x35   :  { %87 = vst [vmem:[#allocation2 + $0x108] sm:$0xff] %v1570_v0  ;;  %88 = vst [vmem:[#allocation2 + $0x60] sm:$0xff] %v1570_v0 }
  0x36   :  { %89 = vst [vmem:[#allocation2 + $0xe0] sm:$0xff] %v1570_v0  ;;  %90 = vst [vmem:[#allocation2 + $0x188] sm:$0xff] %v1570_v0 }
  0x37   :  { %91 = vst [vmem:[#allocation2 + $0x138] sm:$0xff] %v1570_v0  ;;  %92 = vst [vmem:[#allocation2 + $0x140] sm:$0xff] %v1570_v0 }
  0x38   :  { %93 = vst [vmem:[#allocation2 + $0x80] sm:$0xff] %v1570_v0  ;;  %94 = vst [vmem:[#allocation2 + $0x1a8] sm:$0xff] %v1570_v0 }
  0x39   :  { %95 = vst [vmem:[#allocation2 + $0x1b8] sm:$0xff] %v1570_v0  ;;  %96 = vst [vmem:[#allocation2 + $0x28] sm:$0xff] %v1570_v0 }
  0x3a   :  { %97 = vst [vmem:[#allocation2 + $0x1e8] sm:$0xff] %v1570_v0  ;;  %98 = vst [vmem:[#allocation2 + $0xf8] sm:$0xff] %v1570_v0 }
  0x3b   :  { %99 = vst [vmem:[#allocation2 + $0x160] sm:$0xff] %v1570_v0  ;;  %100 = vst [vmem:[#allocation2 + $0x30] sm:$0xff] %v1570_v0 }
  0x3c   :  { %101 = vst [vmem:[#allocation2 + $0x1e0] sm:$0xff] %v1570_v0  ;;  %102 = vst [vmem:[#allocation2] sm:$0xff] %v1570_v0 }
  0x3d   :  { %103 = vst [vmem:[#allocation2 + $0xf0] sm:$0xff] %v1570_v0  ;;  %104 = vst [vmem:[#allocation2 + $0x8] sm:$0xff] %v1570_v0 }
  0x3e   :  { %105 = vst [vmem:[#allocation2 + $0x148] sm:$0xff] %v1570_v0  ;;  %106 = vst [vmem:[#allocation2 + $0x1d0] sm:$0xff] %v1570_v0 }
  0x3f   :  { %107 = vst [vmem:[#allocation2 + $0x100] sm:$0xff] %v1570_v0  ;;  %108 = vst [vmem:[#allocation2 + $0xc8] sm:$0xff] %v1570_v0 }
  0x40   :  { %109 = vst [vmem:[#allocation2 + $0x40] sm:$0xff] %v1570_v0  ;;  %110 = vst [vmem:[#allocation2 + $0x1f8] sm:$0xff] %v1570_v0 }
  0x41   :  { %111 = vst [vmem:[#allocation2 + $0x20] sm:$0xff] %v1570_v0  ;;  %112 = vst [vmem:[#allocation2 + $0x128] sm:$0xff] %v1570_v0 }
  0x42   :  { %113 = vst [vmem:[#allocation2 + $0x1a0] sm:$0xff] %v1570_v0  ;;  %114 = vst [vmem:[#allocation2 + $0x1f0] sm:$0xff] %v1570_v0 }
  0x43   :  { %115 = vst [vmem:[#allocation2 + $0xe8] sm:$0xff] %v1570_v0  ;;  %116 = vst [vmem:[#allocation2 + $0x78] sm:$0xff] %v1570_v0 }
  0x44   :  { %117 = vst [vmem:[#allocation2 + $0x70] sm:$0xff] %v1570_v0  ;;  %118 = vst [vmem:[#allocation2 + $0x90] sm:$0xff] %v1570_v0 }
  0x45   :  { %119 = vst [vmem:[#allocation2 + $0x1d8] sm:$0xff] %v1570_v0  ;;  %120 = vst [vmem:[#allocation2 + $0xd0] sm:$0xff] %v1570_v0 }
  0x46   :  { %121 = vst [vmem:[#allocation2 + $0xb8] sm:$0xff] %v1570_v0  ;;  %122 = vst [vmem:[#allocation2 + $0x88] sm:$0xff] %v1570_v0 }
  0x47   :  { %123 = vst [vmem:[#allocation2 + $0xa8] sm:$0xff] %v1570_v0  ;;  %124 = vst [vmem:[#allocation2 + $0x1c8] sm:$0xff] %v1570_v0 }
  0x48   :  { %125 = vst [vmem:[#allocation2 + $0x170] sm:$0xff] %v1570_v0  ;;  %126 = vst [vmem:[#allocation2 + $0x178] sm:$0xff] %v1570_v0 }
  0x49   :  { %127 = vst [vmem:[#allocation2 + $0x68] sm:$0xff] %v1570_v0  ;;  %128 = vst [vmem:[#allocation2 + $0x190] sm:$0xff] %v1570_v0  ;;  %141 = sbr.rel (%p1230_p6) target bundleno = 401 (0x191), region = 25 }
  0x4a   :  { %129 = vst [vmem:[#allocation2 + $0x198] sm:$0xff] %v1570_v0  ;;  %130 = vst [vmem:[#allocation2 + $0x38] sm:$0xff] %v1570_v0 }
  0x4b   :  { %131 = vst [vmem:[#allocation2 + $0xc0] sm:$0xff] %v1570_v0  ;;  %132 = vst [vmem:[#allocation2 + $0x1c0] sm:$0xff] %v1570_v0 }
  0x4c   :  { %133 = vst [vmem:[#allocation2 + $0x158] sm:$0xff] %v1570_v0  ;;  %134 = vst [vmem:[#allocation2 + $0x10] sm:$0xff] %v1570_v0 }
  0x4d   :  { %135 = vst [vmem:[#allocation2 + $0x58] sm:$0xff] %v1570_v0  ;;  %136 = vst [vmem:[#allocation2 + $0xa0] sm:$0xff] %v1570_v0 }
  0x4e   :  { %v1400_v1 = vld [vmem:[#allocation9 + $0x74] ss:$8 sps:$4 sm:$0xff]   ;;  %v1402_v2 = vld [vmem:[#allocation9 + $0x70] ss:$8 sps:$4 sm:$0xff]   ;;  %v1403_v3 = vld [vmem:[#allocation9 + $0x64] ss:$8 sps:$4 sm:$0xff]  }
  0x4f   :  { %590 = vmatprep.subr.bf16.mxu0 %v1400_v1  ;;  %1362 = vmatprep.subr.bf16.mxu1 %v1400_v1  ;;  %v1405_v4 = vld [vmem:[#allocation9 + $0x60] ss:$8 sps:$4 sm:$0xff]   ;;  %v1406_v5 = vld [vmem:[#allocation9 + $0x54] ss:$8 sps:$4 sm:$0xff]   ;;  %v1408_v6 = vld [vmem:[#allocation9 + $0x50] ss:$8 sps:$4 sm:$0xff]  }
  0x50   :  { %591 = vmatpush1.bf16.msra.mxu0 %v1402_v2  ;;  %1378 = vmatpush1.bf16.msra.mxu1 %v1402_v2  ;;  %v1409_v7 = vld [vmem:[#allocation9 + $0x44] ss:$8 sps:$4 sm:$0xff]   ;;  %v1411_v8 = vld [vmem:[#allocation9 + $0x40] ss:$8 sps:$4 sm:$0xff]   ;;  %v1412_v9 = vld [vmem:[#allocation9 + $0x34] ss:$8 sps:$4 sm:$0xff]  }
  0x51   :  { %592 = vmatprep.subr.bf16.mxu0 %v1403_v3  ;;  %1363 = vmatprep.subr.bf16.mxu1 %v1403_v3  ;;  %v1414_v10 = vld [vmem:[#allocation9 + $0x30] ss:$8 sps:$4 sm:$0xff]   ;;  %v1415_v11 = vld [vmem:[#allocation9 + $0x24] ss:$8 sps:$4 sm:$0xff]   ;;  %v1417_v12 = vld [vmem:[#allocation9 + $0x20] ss:$8 sps:$4 sm:$0xff]  }
  0x52   :  { %v1418_v13 = vld [vmem:[#allocation9 + $0x14] ss:$8 sps:$4 sm:$0xff]   ;;  %v1450_v14 = vld [vmem:[#allocation6 + $0x4] ss:$8 sps:$4 sm:$0xff]   ;;  %v1420_v15 = vld [vmem:[#allocation9 + $0x10] ss:$8 sps:$4 sm:$0xff]  }
  0x53   :  { %v1453_v16 = vld [vmem:[#allocation6 + $0x84] ss:$8 sps:$4 sm:$0xff]   ;;  %622 = vmatprep.mubr.bf16.mxu0 %v1450_v14  ;;  %v1423_v18 = vld [vmem:[#allocation9] ss:$8 sps:$4 sm:$0xff]   ;;  %v1424_v19 = vld [vmem:[#allocation9 + $0xf4] ss:$8 sps:$4 sm:$0xff]  }
  0x54   :  { %593 = vmatpush1.bf16.msra.mxu0 %v1405_v4  ;;  %1379 = vmatpush1.bf16.msra.mxu1 %v1405_v4  ;;  %v1421_v17 = vld [vmem:[#allocation9 + $0x4] ss:$8 sps:$4 sm:$0xff]   ;;  %v1426_v20 = vld [vmem:[#allocation9 + $0xf0] ss:$8 sps:$4 sm:$0xff]   ;;  %v1429_v22 = vld [vmem:[#allocation9 + $0xe0] ss:$8 sps:$4 sm:$0xff]  }
  0x55   :  { %594 = vmatprep.subr.bf16.mxu0 %v1406_v5  ;;  %1364 = vmatprep.subr.bf16.mxu1 %v1406_v5  ;;  %v1427_v21 = vld [vmem:[#allocation9 + $0xe4] ss:$8 sps:$4 sm:$0xff]   ;;  %v1430_v23 = vld [vmem:[#allocation9 + $0xd4] ss:$8 sps:$4 sm:$0xff]   ;;  %v1432_v24 = vld [vmem:[#allocation9 + $0xd0] ss:$8 sps:$4 sm:$0xff]  }
  0x56   :  { %702 = vmatprep.mubr.bf16.mxu1 %v1453_v16  ;;  %v1433_v25 = vld [vmem:[#allocation9 + $0xc4] ss:$8 sps:$4 sm:$0xff]   ;;  %v1435_v26 = vld [vmem:[#allocation9 + $0xc0] ss:$8 sps:$4 sm:$0xff]   ;;  %v1436_v27 = vld [vmem:[#allocation9 + $0xb4] ss:$8 sps:$4 sm:$0xff]  }
  0x57   :  { %v1438_v28 = vld [vmem:[#allocation9 + $0xb0] ss:$8 sps:$4 sm:$0xff]   ;;  %v1439_v29 = vld [vmem:[#allocation9 + $0xa4] ss:$8 sps:$4 sm:$0xff]   ;;  %v1441_v30 = vld [vmem:[#allocation9 + $0xa0] ss:$8 sps:$4 sm:$0xff]  }
  0x58   :  { %595 = vmatpush1.bf16.msra.mxu0 %v1408_v6  ;;  %1380 = vmatpush1.bf16.msra.mxu1 %v1408_v6  ;;  %v1442_v31 = vld [vmem:[#allocation9 + $0x94] ss:$8 sps:$4 sm:$0xff]   ;;  %v1444_v32 = vld [vmem:[#allocation9 + $0x90] ss:$8 sps:$4 sm:$0xff]   ;;  %v1445_v33 = vld [vmem:[#allocation9 + $0x84] ss:$8 sps:$4 sm:$0xff]  }
  0x59   :  { %596 = vmatprep.subr.bf16.mxu0 %v1409_v7  ;;  %1365 = vmatprep.subr.bf16.mxu1 %v1409_v7  ;;  %v1447_v34 = vld [vmem:[#allocation9 + $0x80] ss:$8 sps:$4 sm:$0xff]   ;;  %v1454_v37 = vld [vmem:[#allocation6 + $0x14] ss:$8 sps:$4 sm:$0xff]   ;;  %v1458_v39 = vld [vmem:[#allocation6 + $0x10] ss:$8 sps:$4 sm:$0xff]  }
  0x5a   :  { %v1448_v35 = vld [vmem:[#allocation6] ss:$8 sps:$4 sm:$0xff]   ;;  %v1456_v38 = vld [vmem:[#allocation6 + $0x94] ss:$8 sps:$4 sm:$0xff]   ;;  %v1459_v40 = vld [vmem:[#allocation6 + $0x90] ss:$8 sps:$4 sm:$0xff]  }
  0x5b   :  { %v1451_v36 = vld [vmem:[#allocation6 + $0x80] ss:$8 sps:$4 sm:$0xff]   ;;  %v1460_v41 = vld [vmem:[#allocation6 + $0x24] ss:$8 sps:$4 sm:$0xff]   ;;  %v1466_v45 = vld [vmem:[#allocation6 + $0x34] ss:$8 sps:$4 sm:$0xff]  }
  0x5c   :  { %597 = vmatpush1.bf16.msra.mxu0 %v1411_v8  ;;  %1381 = vmatpush1.bf16.msra.mxu1 %v1411_v8  ;;  %v1462_v42 = vld [vmem:[#allocation6 + $0xa4] ss:$8 sps:$4 sm:$0xff]   ;;  %v1464_v43 = vld [vmem:[#allocation6 + $0x20] ss:$8 sps:$4 sm:$0xff]   ;;  %v1468_v46 = vld [vmem:[#allocation6 + $0xb4] ss:$8 sps:$4 sm:$0xff]  }
  0x5d   :  { %598 = vmatprep.subr.bf16.mxu0 %v1412_v9  ;;  %1366 = vmatprep.subr.bf16.mxu1 %v1412_v9  ;;  %v1465_v44 = vld [vmem:[#allocation6 + $0xa0] ss:$8 sps:$4 sm:$0xff]   ;;  %v1470_v47 = vld [vmem:[#allocation6 + $0x30] ss:$8 sps:$4 sm:$0xff]   ;;  %v1472_v49 = vld [vmem:[#allocation6 + $0x44] ss:$8 sps:$4 sm:$0xff]  }
  0x5e   :  { %v1471_v48 = vld [vmem:[#allocation6 + $0xb0] ss:$8 sps:$4 sm:$0xff]   ;;  %v1474_v50 = vld [vmem:[#allocation6 + $0xc4] ss:$8 sps:$4 sm:$0xff]   ;;  %v1476_v51 = vld [vmem:[#allocation6 + $0x40] ss:$8 sps:$4 sm:$0xff]  }
  0x5f   :  { %v1477_v52 = vld [vmem:[#allocation6 + $0xc0] ss:$8 sps:$4 sm:$0xff]   ;;  %v1478_v53 = vld [vmem:[#allocation6 + $0x54] ss:$8 sps:$4 sm:$0xff]   ;;  %v1482_v55 = vld [vmem:[#allocation6 + $0x50] ss:$8 sps:$4 sm:$0xff]  }
  0x60   :  { %599 = vmatpush1.bf16.msra.mxu0 %v1414_v10  ;;  %1382 = vmatpush1.bf16.msra.mxu1 %v1414_v10  ;;  %v1480_v54 = vld [vmem:[#allocation6 + $0xd4] ss:$8 sps:$4 sm:$0xff]   ;;  %v1483_v56 = vld [vmem:[#allocation6 + $0xd0] ss:$8 sps:$4 sm:$0xff]   ;;  %v1484_v57 = vld [vmem:[#allocation6 + $0x64] ss:$8 sps:$4 sm:$0xff]  }
  0x61   :  { %600 = vmatprep.subr.bf16.mxu0 %v1415_v11  ;;  %1367 = vmatprep.subr.bf16.mxu1 %v1415_v11  ;;  %v1486_v58 = vld [vmem:[#allocation6 + $0xe4] ss:$8 sps:$4 sm:$0xff]   ;;  %v1488_v59 = vld [vmem:[#allocation6 + $0x60] ss:$8 sps:$4 sm:$0xff]   ;;  %v1490_v61 = vld [vmem:[#allocation6 + $0x74] ss:$8 sps:$4 sm:$0xff]  }
  0x62   :  { %v1489_v60 = vld [vmem:[#allocation6 + $0xe0] ss:$8 sps:$4 sm:$0xff]   ;;  %v1492_v62 = vld [vmem:[#allocation6 + $0xf4] ss:$8 sps:$4 sm:$0xff]   ;;  %v1494_v63 = vld [vmem:[#allocation6 + $0x70] ss:$8 sps:$4 sm:$0xff]  }
  0x63   :  { %v1495_v0 = vld [vmem:[#allocation6 + $0xf0] ss:$8 sps:$4 sm:$0xff]   ;;  %v174_v2 = vld [vmem:[#allocation2 + $0x148] sm:$0xff] }
  0x64   :  { %601 = vmatpush1.bf16.msra.mxu0 %v1417_v12  ;;  %1383 = vmatpush1.bf16.msra.mxu1 %v1417_v12  ;;  %v142_v1 = vld [vmem:[#allocation2 + $0xb0] sm:$0xff]  ;;  %v144_v11 = vld [vmem:[#allocation2 + $0xd8] sm:$0xff]  ;;  %v176_v12 = vld [vmem:[#allocation2 + $0x100] sm:$0xff] }
  0x65   :  { %602 = vmatprep.subr.bf16.mxu0 %v1418_v13  ;;  %1368 = vmatprep.subr.bf16.mxu1 %v1418_v13  ;;  %v143_v5 = vld [vmem:[#allocation2 + $0x1b0] sm:$0xff] }
  0x66   :  { %v175_v6 = vld [vmem:[#allocation2 + $0x1d0] sm:$0xff] }
  0x68   :  { %603 = vmatpush1.bf16.msra.mxu0 %v1420_v15  ;;  %1384 = vmatpush1.bf16.msra.mxu1 %v1420_v15 }
  0x69   :  { %604 = vmatprep.subr.bf16.mxu0 %v1421_v17  ;;  %1369 = vmatprep.subr.bf16.mxu1 %v1421_v17  ;;  %v145_v17 = vld [vmem:[#allocation2 + $0x18] sm:$0xff] }
  0x6c   :  { %605 = vmatpush1.bf16.msra.mxu0 %v1423_v18  ;;  %1385 = vmatpush1.bf16.msra.mxu1 %v1423_v18  ;;  %v177_v18 = vld [vmem:[#allocation2 + $0xc8] sm:$0xff] }
  0x6d   :  { %606 = vmatprep.subr.bf16.mxu0 %v1424_v19  ;;  %1370 = vmatprep.subr.bf16.mxu1 %v1424_v19 }
  0x70   :  { %607 = vmatpush2.bf16.msra.mxu0 %v1426_v20  ;;  %1386 = vmatpush2.bf16.msra.mxu1 %v1426_v20 }
  0x71   :  { %608 = vmatprep.subr.bf16.mxu0 %v1427_v21  ;;  %1371 = vmatprep.subr.bf16.mxu1 %v1427_v21 }
  0x74   :  { %609 = vmatpush2.bf16.msra.mxu0 %v1429_v22  ;;  %1387 = vmatpush2.bf16.msra.mxu1 %v1429_v22 }
  0x75   :  { %610 = vmatprep.subr.bf16.mxu0 %v1430_v23  ;;  %1372 = vmatprep.subr.bf16.mxu1 %v1430_v23  ;;  %v146_v23 = vld [vmem:[#allocation2 + $0x50] sm:$0xff] }
  0x78   :  { %611 = vmatpush2.bf16.msra.mxu0 %v1432_v24  ;;  %1388 = vmatpush2.bf16.msra.mxu1 %v1432_v24  ;;  %v178_v24 = vld [vmem:[#allocation2 + $0x40] sm:$0xff] }
  0x79   :  { %612 = vmatprep.subr.bf16.mxu0 %v1433_v25  ;;  %1373 = vmatprep.subr.bf16.mxu1 %v1433_v25 }
  0x7c   :  { %613 = vmatpush2.bf16.msra.mxu0 %v1435_v26  ;;  %1389 = vmatpush2.bf16.msra.mxu1 %v1435_v26 }
  0x7d   :  { %614 = vmatprep.subr.bf16.mxu0 %v1436_v27  ;;  %1374 = vmatprep.subr.bf16.mxu1 %v1436_v27 }
  0x80   :  { %615 = vmatpush2.bf16.msra.mxu0 %v1438_v28  ;;  %1390 = vmatpush2.bf16.msra.mxu1 %v1438_v28 }
  0x81   :  { %616 = vmatprep.subr.bf16.mxu0 %v1439_v29  ;;  %1375 = vmatprep.subr.bf16.mxu1 %v1439_v29  ;;  %v147_v29 = vld [vmem:[#allocation2 + $0x168] sm:$0xff] }
  0x84   :  { %617 = vmatpush2.bf16.msra.mxu0 %v1441_v30  ;;  %1391 = vmatpush2.bf16.msra.mxu1 %v1441_v30  ;;  %v179_v30 = vld [vmem:[#allocation2 + $0x1f8] sm:$0xff] }
  0x85   :  { %618 = vmatprep.subr.bf16.mxu0 %v1442_v31  ;;  %1376 = vmatprep.subr.bf16.mxu1 %v1442_v31 }
  0x88   :  { %619 = vmatpush2.bf16.msra.mxu0 %v1444_v32  ;;  %1392 = vmatpush2.bf16.msra.mxu1 %v1444_v32 }
  0x89   :  { %620 = vmatprep.subr.bf16.mxu0 %v1445_v33  ;;  %1377 = vmatprep.subr.bf16.mxu1 %v1445_v33 }
  0x8c   :  { %621 = vmatpush2.bf16.msra.mxu0 %v1447_v34  ;;  %1393 = vmatpush2.bf16.msra.mxu1 %v1447_v34 }
  0x8f   :  { %623 = vmatmul.mubr.bf16.vlgmr.msra.gmra.mxu0 %v1448_v35  ;;  %703 = vmatmul.mubr.bf16.vlgmr.msra.gmra.mxu1 %v1451_v36  ;;  %v148_v35 = vld [vmem:[#allocation2 + $0x130] sm:$0xff]  ;;  %v180_v36 = vld [vmem:[#allocation2 + $0x20] sm:$0xff] }
  0x90   :  { %632 = vmatprep.mubr.bf16.mxu0 %v1454_v37  ;;  %712 = vmatprep.mubr.bf16.mxu1 %v1456_v38 }
  0x97   :  { %633 = vmatmul.mubr.bf16.gmra.mxu0 %v1458_v39  ;;  %713 = vmatmul.mubr.bf16.gmra.mxu1 %v1459_v40 }
  0x98   :  { %642 = vmatprep.mubr.bf16.mxu0 %v1460_v41  ;;  %722 = vmatprep.mubr.bf16.mxu1 %v1462_v42  ;;  %v149_v41 = vld [vmem:[#allocation2 + $0x48] sm:$0xff] }
  0x99   :  { %v181_v42 = vld [vmem:[#allocation2 + $0x128] sm:$0xff] }
  0x9f   :  { %643 = vmatmul.mubr.bf16.gmra.mxu0 %v1464_v43  ;;  %723 = vmatmul.mubr.bf16.gmra.mxu1 %v1465_v44 }
  0xa0   :  { %652 = vmatprep.mubr.bf16.mxu0 %v1466_v45  ;;  %732 = vmatprep.mubr.bf16.mxu1 %v1468_v46 }
  0xa7   :  { %653 = vmatmul.mubr.bf16.gmra.mxu0 %v1470_v47  ;;  %733 = vmatmul.mubr.bf16.gmra.mxu1 %v1471_v48  ;;  %v150_v47 = vld [vmem:[#allocation2 + $0x180] sm:$0xff] }
  0xa8   :  { %662 = vmatprep.mubr.bf16.mxu0 %v1472_v49  ;;  %742 = vmatprep.mubr.bf16.mxu1 %v1474_v50  ;;  %v182_v48 = vld [vmem:[#allocation2 + $0x1a0] sm:$0xff] }
  0xaf   :  { %663 = vmatmul.mubr.bf16.gmra.mxu0 %v1476_v51  ;;  %743 = vmatmul.mubr.bf16.gmra.mxu1 %v1477_v52 }
  0xb0   :  { %672 = vmatprep.mubr.bf16.mxu0 %v1478_v53  ;;  %752 = vmatprep.mubr.bf16.mxu1 %v1480_v54  ;;  %v151_v53 = vld [vmem:[#allocation2 + $0x110] sm:$0xff] }
  0xb1   :  { %v183_v54 = vld [vmem:[#allocation2 + $0x1f0] sm:$0xff] }
  0xb7   :  { %673 = vmatmul.mubr.bf16.gmra.mxu0 %v1482_v55  ;;  %753 = vmatmul.mubr.bf16.gmra.mxu1 %v1483_v56 }
  0xb8   :  { %682 = vmatprep.mubr.bf16.mxu0 %v1484_v57  ;;  %762 = vmatprep.mubr.bf16.mxu1 %v1486_v58 }
  0xbf   :  { %683 = vmatmul.mubr.bf16.gmra.mxu0 %v1488_v59  ;;  %763 = vmatmul.mubr.bf16.gmra.mxu1 %v1489_v60  ;;  %v152_v59 = vld [vmem:[#allocation2 + $0x118] sm:$0xff]  ;;  %v184_v60 = vld [vmem:[#allocation2 + $0xe8] sm:$0xff] }
  0xc0   :  { %692 = vmatprep.mubr.bf16.mxu0 %v1490_v61  ;;  %772 = vmatprep.mubr.bf16.mxu1 %v1492_v62 }
  0xc7   :  { %693 = vmatmul.mubr.bf16.gmra.mxu0 %v1494_v63  ;;  %773 = vmatmul.mubr.bf16.gmra.mxu1 %v1495_v0 }
 0x14f   :  { %v624_v3 = vpop.f32.mrf.mxu0  ;;  %v704_v4 = vpop.f32.mrf.mxu1 }
 0x150   :  { %v783_v7 = vadd.f32 %v624_v3, %v142_v1  ;;  %v815_v8 = vadd.f32 %v704_v4, %v174_v2  ;;  %v153_v1 = vld [vmem:[#allocation2 + $0x98] sm:$0xff] }
 0x151   :  { %v626_v9 = vpop.f32.mrf.mxu0  ;;  %v706_v10 = vpop.f32.mrf.mxu1  ;;  %v185_v2 = vld [vmem:[#allocation2 + $0x78] sm:$0xff] }
 0x152   :  { %847 = vst [vmem:[#allocation2 + $0xb0] sm:$0xff] %v783_v7  ;;  %879 = vst [vmem:[#allocation2 + $0x148] sm:$0xff] %v815_v8  ;;  %v784_v13 = vadd.f32 %v626_v9, %v143_v5  ;;  %v816_v14 = vadd.f32 %v706_v10, %v175_v6  ;;  %v154_v7 = vld [vmem:[#allocation2 + $0x120] sm:$0xff]  ;;  %v186_v8 = vld [vmem:[#allocation2 + $0x70] sm:$0xff] }
 0x153   :  { %v628_v15 = vpop.f32.mrf.mxu0  ;;  %v708_v16 = vpop.f32.mrf.mxu1 }
 0x154   :  { %848 = vst [vmem:[#allocation2 + $0x1b0] sm:$0xff] %v784_v13  ;;  %880 = vst [vmem:[#allocation2 + $0x1d0] sm:$0xff] %v816_v14  ;;  %v785_v19 = vadd.f32 %v628_v15, %v144_v11  ;;  %v817_v20 = vadd.f32 %v708_v16, %v176_v12  ;;  %v155_v13 = vld [vmem:[#allocation2 + $0x150] sm:$0xff] }
 0x155   :  { %v630_v21 = vpop.f32.mrf.mxu0  ;;  %v710_v22 = vpop.f32.mrf.mxu1  ;;  %v187_v14 = vld [vmem:[#allocation2 + $0x90] sm:$0xff] }
 0x156   :  { %849 = vst [vmem:[#allocation2 + $0xd8] sm:$0xff] %v785_v19  ;;  %881 = vst [vmem:[#allocation2 + $0x100] sm:$0xff] %v817_v20  ;;  %v786_v25 = vadd.f32 %v630_v21, %v145_v17  ;;  %v818_v26 = vadd.f32 %v710_v22, %v177_v18  ;;  %v156_v19 = vld [vmem:[#allocation2 + $0x108] sm:$0xff]  ;;  %v188_v20 = vld [vmem:[#allocation2 + $0x1d8] sm:$0xff] }
 0x157   :  { %v634_v27 = vpop.f32.mrf.mxu0  ;;  %v714_v28 = vpop.f32.mrf.mxu1 }
 0x158   :  { %850 = vst [vmem:[#allocation2 + $0x18] sm:$0xff] %v786_v25  ;;  %882 = vst [vmem:[#allocation2 + $0xc8] sm:$0xff] %v818_v26  ;;  %v787_v31 = vadd.f32 %v634_v27, %v146_v23  ;;  %v819_v32 = vadd.f32 %v714_v28, %v178_v24  ;;  %v157_v25 = vld [vmem:[#allocation2 + $0x60] sm:$0xff]  ;;  %v189_v26 = vld [vmem:[#allocation2 + $0xd0] sm:$0xff] }
 0x159   :  { %v636_v33 = vpop.f32.mrf.mxu0  ;;  %v716_v34 = vpop.f32.mrf.mxu1 }
 0x15a   :  { %851 = vst [vmem:[#allocation2 + $0x50] sm:$0xff] %v787_v31  ;;  %883 = vst [vmem:[#allocation2 + $0x40] sm:$0xff] %v819_v32  ;;  %v788_v37 = vadd.f32 %v636_v33, %v147_v29  ;;  %v820_v38 = vadd.f32 %v716_v34, %v179_v30  ;;  %v158_v31 = vld [vmem:[#allocation2 + $0xe0] sm:$0xff]  ;;  %v190_v32 = vld [vmem:[#allocation2 + $0xb8] sm:$0xff] }
 0x15b   :  { %v638_v39 = vpop.f32.mrf.mxu0  ;;  %v718_v40 = vpop.f32.mrf.mxu1 }
 0x15c   :  { %852 = vst [vmem:[#allocation2 + $0x168] sm:$0xff] %v788_v37  ;;  %884 = vst [vmem:[#allocation2 + $0x1f8] sm:$0xff] %v820_v38  ;;  %v789_v43 = vadd.f32 %v638_v39, %v148_v35  ;;  %v821_v44 = vadd.f32 %v718_v40, %v180_v36  ;;  %v159_v37 = vld [vmem:[#allocation2 + $0x188] sm:$0xff] }
 0x15d   :  { %v640_v45 = vpop.f32.mrf.mxu0  ;;  %v720_v46 = vpop.f32.mrf.mxu1  ;;  %v191_v38 = vld [vmem:[#allocation2 + $0x88] sm:$0xff] }
 0x15e   :  { %853 = vst [vmem:[#allocation2 + $0x130] sm:$0xff] %v789_v43  ;;  %885 = vst [vmem:[#allocation2 + $0x20] sm:$0xff] %v821_v44  ;;  %v790_v49 = vadd.f32 %v640_v45, %v149_v41  ;;  %v822_v50 = vadd.f32 %v720_v46, %v181_v42  ;;  %v160_v43 = vld [vmem:[#allocation2 + $0x138] sm:$0xff]  ;;  %v192_v44 = vld [vmem:[#allocation2 + $0xa8] sm:$0xff] }
 0x15f   :  { %v644_v51 = vpop.f32.mrf.mxu0  ;;  %v724_v52 = vpop.f32.mrf.mxu1 }
 0x160   :  { %854 = vst [vmem:[#allocation2 + $0x48] sm:$0xff] %v790_v49  ;;  %886 = vst [vmem:[#allocation2 + $0x128] sm:$0xff] %v822_v50  ;;  %v791_v55 = vadd.f32 %v644_v51, %v150_v47  ;;  %v823_v56 = vadd.f32 %v724_v52, %v182_v48  ;;  %v161_v49 = vld [vmem:[#allocation2 + $0x140] sm:$0xff]  ;;  %v193_v50 = vld [vmem:[#allocation2 + $0x1c8] sm:$0xff] }
 0x161   :  { %v646_v57 = vpop.f32.mrf.mxu0  ;;  %v726_v58 = vpop.f32.mrf.mxu1 }
 0x162   :  { %855 = vst [vmem:[#allocation2 + $0x180] sm:$0xff] %v791_v55  ;;  %887 = vst [vmem:[#allocation2 + $0x1a0] sm:$0xff] %v823_v56  ;;  %v792_v61 = vadd.f32 %v646_v57, %v151_v53  ;;  %v824_v62 = vadd.f32 %v726_v58, %v183_v54  ;;  %v162_v55 = vld [vmem:[#allocation2 + $0x80] sm:$0xff]  ;;  %v194_v56 = vld [vmem:[#allocation2 + $0x170] sm:$0xff] }
 0x163   :  { %v648_v63 = vpop.f32.mrf.mxu0  ;;  %v728_v0 = vpop.f32.mrf.mxu1 }
 0x164   :  { %856 = vst [vmem:[#allocation2 + $0x110] sm:$0xff] %v792_v61  ;;  %888 = vst [vmem:[#allocation2 + $0x1f0] sm:$0xff] %v824_v62  ;;  %v793_v3 = vadd.f32 %v648_v63, %v152_v59  ;;  %v825_v4 = vadd.f32 %v728_v0, %v184_v60  ;;  %v163_v61 = vld [vmem:[#allocation2 + $0x1a8] sm:$0xff]  ;;  %v195_v62 = vld [vmem:[#allocation2 + $0x178] sm:$0xff] }
 0x165   :  { %v650_v5 = vpop.f32.mrf.mxu0  ;;  %v730_v6 = vpop.f32.mrf.mxu1 }
 0x166   :  { %857 = vst [vmem:[#allocation2 + $0x118] sm:$0xff] %v793_v3  ;;  %889 = vst [vmem:[#allocation2 + $0xe8] sm:$0xff] %v825_v4  ;;  %v794_v9 = vadd.f32 %v650_v5, %v153_v1  ;;  %v826_v10 = vadd.f32 %v730_v6, %v185_v2  ;;  %v164_v3 = vld [vmem:[#allocation2 + $0x1b8] sm:$0xff]  ;;  %v196_v4 = vld [vmem:[#allocation2 + $0x68] sm:$0xff] }
 0x167   :  { %v654_v11 = vpop.f32.mrf.mxu0  ;;  %v734_v12 = vpop.f32.mrf.mxu1 }
 0x168   :  { %858 = vst [vmem:[#allocation2 + $0x98] sm:$0xff] %v794_v9  ;;  %890 = vst [vmem:[#allocation2 + $0x78] sm:$0xff] %v826_v10  ;;  %v795_v15 = vadd.f32 %v654_v11, %v154_v7  ;;  %v827_v16 = vadd.f32 %v734_v12, %v186_v8  ;;  %v165_v9 = vld [vmem:[#allocation2 + $0x28] sm:$0xff]  ;;  %v197_v10 = vld [vmem:[#allocation2 + $0x190] sm:$0xff] }
 0x169   :  { %v656_v17 = vpop.f32.mrf.mxu0  ;;  %v736_v18 = vpop.f32.mrf.mxu1 }
 0x16a   :  { %859 = vst [vmem:[#allocation2 + $0x120] sm:$0xff] %v795_v15  ;;  %891 = vst [vmem:[#allocation2 + $0x70] sm:$0xff] %v827_v16  ;;  %v796_v21 = vadd.f32 %v656_v17, %v155_v13  ;;  %v828_v22 = vadd.f32 %v736_v18, %v187_v14  ;;  %v166_v15 = vld [vmem:[#allocation2 + $0x1e8] sm:$0xff]  ;;  %v198_v16 = vld [vmem:[#allocation2 + $0x198] sm:$0xff] }
 0x16b   :  { %v658_v23 = vpop.f32.mrf.mxu0  ;;  %v738_v24 = vpop.f32.mrf.mxu1 }
 0x16c   :  { %860 = vst [vmem:[#allocation2 + $0x150] sm:$0xff] %v796_v21  ;;  %892 = vst [vmem:[#allocation2 + $0x90] sm:$0xff] %v828_v22  ;;  %v797_v27 = vadd.f32 %v658_v23, %v156_v19  ;;  %v829_v28 = vadd.f32 %v738_v24, %v188_v20  ;;  %v167_v21 = vld [vmem:[#allocation2 + $0xf8] sm:$0xff] }
 0x16d   :  { %v660_v29 = vpop.f32.mrf.mxu0  ;;  %v740_v30 = vpop.f32.mrf.mxu1  ;;  %v199_v22 = vld [vmem:[#allocation2 + $0x38] sm:$0xff] }
 0x16e   :  { %861 = vst [vmem:[#allocation2 + $0x108] sm:$0xff] %v797_v27  ;;  %893 = vst [vmem:[#allocation2 + $0x1d8] sm:$0xff] %v829_v28  ;;  %v798_v33 = vadd.f32 %v660_v29, %v157_v25  ;;  %v830_v34 = vadd.f32 %v740_v30, %v189_v26  ;;  %v168_v27 = vld [vmem:[#allocation2 + $0x160] sm:$0xff] }
 0x16f   :  { %v664_v35 = vpop.f32.mrf.mxu0  ;;  %v744_v36 = vpop.f32.mrf.mxu1  ;;  %v200_v28 = vld [vmem:[#allocation2 + $0xc0] sm:$0xff] }
 0x170   :  { %862 = vst [vmem:[#allocation2 + $0x60] sm:$0xff] %v798_v33  ;;  %894 = vst [vmem:[#allocation2 + $0xd0] sm:$0xff] %v830_v34  ;;  %v799_v39 = vadd.f32 %v664_v35, %v158_v31  ;;  %v831_v40 = vadd.f32 %v744_v36, %v190_v32  ;;  %v169_v33 = vld [vmem:[#allocation2 + $0x30] sm:$0xff]  ;;  %v201_v34 = vld [vmem:[#allocation2 + $0x1c0] sm:$0xff] }
 0x171   :  { %v666_v41 = vpop.f32.mrf.mxu0  ;;  %v746_v42 = vpop.f32.mrf.mxu1 }
 0x172   :  { %863 = vst [vmem:[#allocation2 + $0xe0] sm:$0xff] %v799_v39  ;;  %895 = vst [vmem:[#allocation2 + $0xb8] sm:$0xff] %v831_v40  ;;  %v800_v45 = vadd.f32 %v666_v41, %v159_v37  ;;  %v832_v46 = vadd.f32 %v746_v42, %v191_v38  ;;  %v170_v39 = vld [vmem:[#allocation2 + $0x1e0] sm:$0xff]  ;;  %v202_v40 = vld [vmem:[#allocation2 + $0x158] sm:$0xff] }
 0x173   :  { %v668_v47 = vpop.f32.mrf.mxu0  ;;  %v748_v48 = vpop.f32.mrf.mxu1 }
 0x174   :  { %864 = vst [vmem:[#allocation2 + $0x188] sm:$0xff] %v800_v45  ;;  %896 = vst [vmem:[#allocation2 + $0x88] sm:$0xff] %v832_v46  ;;  %v801_v51 = vadd.f32 %v668_v47, %v160_v43  ;;  %v833_v52 = vadd.f32 %v748_v48, %v192_v44  ;;  %v171_v45 = vld [vmem:[#allocation2] sm:$0xff]  ;;  %v203_v46 = vld [vmem:[#allocation2 + $0x10] sm:$0xff] }
 0x175   :  { %v670_v53 = vpop.f32.mrf.mxu0  ;;  %v750_v54 = vpop.f32.mrf.mxu1 }
 0x176   :  { %865 = vst [vmem:[#allocation2 + $0x138] sm:$0xff] %v801_v51  ;;  %897 = vst [vmem:[#allocation2 + $0xa8] sm:$0xff] %v833_v52  ;;  %v802_v57 = vadd.f32 %v670_v53, %v161_v49  ;;  %v834_v58 = vadd.f32 %v750_v54, %v193_v50  ;;  %v172_v51 = vld [vmem:[#allocation2 + $0xf0] sm:$0xff]  ;;  %v204_v52 = vld [vmem:[#allocation2 + $0x58] sm:$0xff] }
 0x177   :  { %v674_v59 = vpop.f32.mrf.mxu0  ;;  %v754_v60 = vpop.f32.mrf.mxu1 }
 0x178   :  { %866 = vst [vmem:[#allocation2 + $0x140] sm:$0xff] %v802_v57  ;;  %898 = vst [vmem:[#allocation2 + $0x1c8] sm:$0xff] %v834_v58  ;;  %v803_v63 = vadd.f32 %v674_v59, %v162_v55  ;;  %v835_v0 = vadd.f32 %v754_v60, %v194_v56  ;;  %v173_v57 = vld [vmem:[#allocation2 + $0x8] sm:$0xff]  ;;  %v205_v58 = vld [vmem:[#allocation2 + $0xa0] sm:$0xff] }
 0x179   :  { %v676_v1 = vpop.f32.mrf.mxu0  ;;  %v756_v2 = vpop.f32.mrf.mxu1 }
 0x17a   :  { %867 = vst [vmem:[#allocation2 + $0x80] sm:$0xff] %v803_v63  ;;  %899 = vst [vmem:[#allocation2 + $0x170] sm:$0xff] %v835_v0  ;;  %v804_v5 = vadd.f32 %v676_v1, %v163_v61  ;;  %v836_v6 = vadd.f32 %v756_v2, %v195_v62 }
 0x17b   :  { %v678_v7 = vpop.f32.mrf.mxu0  ;;  %v758_v8 = vpop.f32.mrf.mxu1 }
 0x17c   :  { %868 = vst [vmem:[#allocation2 + $0x1a8] sm:$0xff] %v804_v5  ;;  %900 = vst [vmem:[#allocation2 + $0x178] sm:$0xff] %v836_v6  ;;  %v805_v11 = vadd.f32 %v678_v7, %v164_v3  ;;  %v837_v12 = vadd.f32 %v758_v8, %v196_v4 }
 0x17d   :  { %v680_v13 = vpop.f32.mrf.mxu0  ;;  %v760_v14 = vpop.f32.mrf.mxu1 }
 0x17e   :  { %869 = vst [vmem:[#allocation2 + $0x1b8] sm:$0xff] %v805_v11  ;;  %901 = vst [vmem:[#allocation2 + $0x68] sm:$0xff] %v837_v12  ;;  %v806_v17 = vadd.f32 %v680_v13, %v165_v9  ;;  %v838_v18 = vadd.f32 %v760_v14, %v197_v10 }
 0x17f   :  { %v684_v19 = vpop.f32.mrf.mxu0  ;;  %v764_v20 = vpop.f32.mrf.mxu1 }
 0x180   :  { %870 = vst [vmem:[#allocation2 + $0x28] sm:$0xff] %v806_v17  ;;  %902 = vst [vmem:[#allocation2 + $0x190] sm:$0xff] %v838_v18  ;;  %v807_v23 = vadd.f32 %v684_v19, %v166_v15  ;;  %v839_v24 = vadd.f32 %v764_v20, %v198_v16 }
 0x181   :  { %v686_v25 = vpop.f32.mrf.mxu0  ;;  %v766_v26 = vpop.f32.mrf.mxu1 }
 0x182   :  { %871 = vst [vmem:[#allocation2 + $0x1e8] sm:$0xff] %v807_v23  ;;  %903 = vst [vmem:[#allocation2 + $0x198] sm:$0xff] %v839_v24  ;;  %v808_v29 = vadd.f32 %v686_v25, %v167_v21  ;;  %v840_v30 = vadd.f32 %v766_v26, %v199_v22 }
 0x183   :  { %v688_v31 = vpop.f32.mrf.mxu0  ;;  %v768_v32 = vpop.f32.mrf.mxu1 }
 0x184   :  { %872 = vst [vmem:[#allocation2 + $0xf8] sm:$0xff] %v808_v29  ;;  %904 = vst [vmem:[#allocation2 + $0x38] sm:$0xff] %v840_v30  ;;  %v809_v35 = vadd.f32 %v688_v31, %v168_v27  ;;  %v841_v36 = vadd.f32 %v768_v32, %v200_v28 }
 0x185   :  { %v690_v37 = vpop.f32.mrf.mxu0  ;;  %v770_v38 = vpop.f32.mrf.mxu1 }
 0x186   :  { %873 = vst [vmem:[#allocation2 + $0x160] sm:$0xff] %v809_v35  ;;  %905 = vst [vmem:[#allocation2 + $0xc0] sm:$0xff] %v841_v36  ;;  %v810_v41 = vadd.f32 %v690_v37, %v169_v33  ;;  %v842_v42 = vadd.f32 %v770_v38, %v201_v34 }
 0x187   :  { %v694_v43 = vpop.f32.mrf.mxu0  ;;  %v774_v44 = vpop.f32.mrf.mxu1 }
 0x188   :  { %874 = vst [vmem:[#allocation2 + $0x30] sm:$0xff] %v810_v41  ;;  %906 = vst [vmem:[#allocation2 + $0x1c0] sm:$0xff] %v842_v42  ;;  %v811_v47 = vadd.f32 %v694_v43, %v170_v39  ;;  %v843_v48 = vadd.f32 %v774_v44, %v202_v40 }
 0x189   :  { %v696_v49 = vpop.f32.mrf.mxu0  ;;  %v776_v50 = vpop.f32.mrf.mxu1 }
 0x18a   :  { %875 = vst [vmem:[#allocation2 + $0x1e0] sm:$0xff] %v811_v47  ;;  %907 = vst [vmem:[#allocation2 + $0x158] sm:$0xff] %v843_v48  ;;  %v812_v53 = vadd.f32 %v696_v49, %v171_v45  ;;  %v844_v54 = vadd.f32 %v776_v50, %v203_v46 }
 0x18b   :  { %v698_v55 = vpop.f32.mrf.mxu0  ;;  %v778_v56 = vpop.f32.mrf.mxu1 }
 0x18c   :  { %876 = vst [vmem:[#allocation2] sm:$0xff] %v812_v53  ;;  %908 = vst [vmem:[#allocation2 + $0x10] sm:$0xff] %v844_v54  ;;  %v813_v59 = vadd.f32 %v698_v55, %v172_v51  ;;  %v845_v60 = vadd.f32 %v778_v56, %v204_v52 }
 0x18d   :  { %v700_v61 = vpop.f32.mrf.mxu0  ;;  %v780_v62 = vpop.f32.mrf.mxu1 }
 0x18e   :  { %877 = vst [vmem:[#allocation2 + $0xf0] sm:$0xff] %v813_v59  ;;  %909 = vst [vmem:[#allocation2 + $0x58] sm:$0xff] %v845_v60  ;;  %v814_v63 = vadd.f32 %v700_v61, %v173_v57  ;;  %v846_v0 = vadd.f32 %v780_v62, %v205_v58 }
 0x190   :  { %878 = vst [vmem:[#allocation2 + $0x8] sm:$0xff] %v814_v63  ;;  %910 = vst [vmem:[#allocation2 + $0xa0] sm:$0xff] %v846_v0 }
 0x191 PF:  { %v914_v1 = vld [vmem:[#allocation2 + $0xb0] sm:$0xff]  ;;  %v916_v3 = vld [vmem:[#allocation2 + $0xd8] sm:$0xff]  ;;  %v919_v7 = vld [vmem:[#allocation2 + $0x168] sm:$0xff]  ;;  %s1571_s1 = smov [#allocation11]  }
 0x192   :  { %v915_v2 = vld [vmem:[#allocation2 + $0x1b0] sm:$0xff]  ;;  %v917_v5 = vld [vmem:[#allocation2 + $0x18] sm:$0xff]  ;;  %v921_v11 = vld [vmem:[#allocation2 + $0x48] sm:$0xff]  ;;  %s1207_s20 = sshll.u32 %s1571_s1, 4  ;;  %s1208_s20 = int_to_ptr.vmem [resolvable:$true] %s1207_s20 }
 0x193   :  { %v1330_v4 = vpack.c.bf16 %v915_v2, %v914_v1  ;;  %v918_v6 = vld [vmem:[#allocation2 + $0x50] sm:$0xff]  ;;  %v1331_v8 = vpack.c.bf16 %v917_v5, %v916_v3  ;;  %v922_v12 = vld [vmem:[#allocation2 + $0x180] sm:$0xff]  ;;  %v924_v15 = vld [vmem:[#allocation2 + $0x118] sm:$0xff]  ;;  %s1540_s21 = scalar_lea.vmem %s1208_s20, 4096  ;;  %p1545_p8 = scmp.lt.s32.totalorder %s1208_s20, %s1208_s20 }
 0x194   :  { %v1332_v9 = vpack.c.bf16 %v919_v7, %v918_v6  ;;  %v920_v10 = vld [vmem:[#allocation2 + $0x130] sm:$0xff]  ;;  %v925_v16 = vld [vmem:[#allocation2 + $0x98] sm:$0xff]  ;;  %v926_v19 = vld [vmem:[#allocation2 + $0x120] sm:$0xff]  ;;  %p1541_p7 = scmp.ne.s32.totalorder %s1208_s20, %s1540_s21  ;;  %p1546_p9 = scmp.lt.s32.totalorder %s1540_s21, %s1540_s21 }
 0x195   :  { %1170 = vst [vmem:[#allocation11] sm:$0xff] %v1330_v4  ;;  %v1333_v13 = vpack.c.bf16 %v921_v11, %v920_v10  ;;  %v923_v14 = vld [vmem:[#allocation2 + $0x110] sm:$0xff]  ;;  %1171 = vst [vmem:[#allocation11 + $0x8] sm:$0xff] %v1331_v8  ;;  %v1335_v18 = vpack.c.bf16 %v925_v16, %v924_v15  ;;  %v928_v21 = vld [vmem:[#allocation2 + $0x108] sm:$0xff] }
 0x196   :  { %1172 = vst [vmem:[#allocation11 + $0x10] sm:$0xff] %v1332_v9  ;;  %v1334_v17 = vpack.c.bf16 %v923_v14, %v922_v12  ;;  %v927_v20 = vld [vmem:[#allocation2 + $0x150] sm:$0xff]  ;;  %v929_v23 = vld [vmem:[#allocation2 + $0x60] sm:$0xff]  ;;  %v931_v25 = vld [vmem:[#allocation2 + $0x188] sm:$0xff]  ;;  %p1547_p10 = por %p1546_p9, %p1545_p8 }
 0x197   :  { %1173 = vst [vmem:[#allocation11 + $0x18] sm:$0xff] %v1333_v13  ;;  %v1336_v22 = vpack.c.bf16 %v927_v20, %v926_v19  ;;  %v930_v24 = vld [vmem:[#allocation2 + $0xe0] sm:$0xff]  ;;  %1175 = vst [vmem:[#allocation11 + $0x28] sm:$0xff] %v1335_v18  ;;  %v1337_v26 = vpack.c.bf16 %v929_v23, %v928_v21  ;;  %v932_v28 = vld [vmem:[#allocation2 + $0x138] sm:$0xff] }
 0x198   :  { %1174 = vst [vmem:[#allocation11 + $0x20] sm:$0xff] %v1334_v17  ;;  %v1338_v27 = vpack.c.bf16 %v931_v25, %v930_v24  ;;  %v933_v29 = vld [vmem:[#allocation2 + $0x140] sm:$0xff]  ;;  %v935_v32 = vld [vmem:[#allocation2 + $0x1a8] sm:$0xff]  ;;  %v936_v33 = vld [vmem:[#allocation2 + $0x1b8] sm:$0xff]  ;;  %p1548_p11 = pnand %p1547_p10, %p1541_p7 }
 0x199   :  { %v934_v30 = vld [vmem:[#allocation2 + $0x80] sm:$0xff]  ;;  %1176 = vst [vmem:[#allocation11 + $0x30] sm:$0xff] %v1336_v22  ;;  %v1339_v31 = vpack.c.bf16 %v933_v29, %v932_v28  ;;  %v937_v34 = vld [vmem:[#allocation2 + $0x28] sm:$0xff]  ;;  %1177 = vst [vmem:[#allocation11 + $0x38] sm:$0xff] %v1337_v26 }
 0x19a   :  { %1178 = vst [vmem:[#allocation11 + $0x40] sm:$0xff] %v1338_v27  ;;  %v1340_v35 = vpack.c.bf16 %v935_v32, %v934_v30  ;;  %v1341_v36 = vpack.c.bf16 %v937_v34, %v936_v33  ;;  %v938_v37 = vld [vmem:[#allocation2 + $0x1e8] sm:$0xff]  ;;  %v939_v38 = vld [vmem:[#allocation2 + $0xf8] sm:$0xff]  ;;  %v940_v39 = vld [vmem:[#allocation2 + $0x160] sm:$0xff] }
 0x19b   :  { %1179 = vst [vmem:[#allocation11 + $0x48] sm:$0xff] %v1339_v31  ;;  %v1342_v40 = vpack.c.bf16 %v939_v38, %v938_v37  ;;  %v941_v41 = vld [vmem:[#allocation2 + $0x30] sm:$0xff]  ;;  %v942_v42 = vld [vmem:[#allocation2 + $0x1e0] sm:$0xff]  ;;  %v945_v47 = vld [vmem:[#allocation2 + $0x8] sm:$0xff] }
 0x19c   :  { %v943_v43 = vld [vmem:[#allocation2] sm:$0xff]  ;;  %1180 = vst [vmem:[#allocation11 + $0x50] sm:$0xff] %v1340_v35  ;;  %1181 = vst [vmem:[#allocation11 + $0x58] sm:$0xff] %v1341_v36  ;;  %v1343_v44 = vpack.c.bf16 %v941_v41, %v940_v39  ;;  %v944_v46 = vld [vmem:[#allocation2 + $0xf0] sm:$0xff] }
 0x19d   :  { %v1344_v45 = vpack.c.bf16 %v943_v43, %v942_v42  ;;  %v946_v48 = vld [vmem:[#allocation2 + $0x148] sm:$0xff]  ;;  %1182 = vst [vmem:[#allocation11 + $0x60] sm:$0xff] %v1342_v40  ;;  %v1345_v49 = vpack.c.bf16 %v945_v47, %v944_v46  ;;  %v947_v50 = vld [vmem:[#allocation2 + $0x1d0] sm:$0xff]  ;;  %v948_v51 = vld [vmem:[#allocation2 + $0x100] sm:$0xff] }
 0x19e   :  { %v949_v52 = vld [vmem:[#allocation2 + $0xc8] sm:$0xff]  ;;  %1183 = vst [vmem:[#allocation11 + $0x68] sm:$0xff] %v1343_v44  ;;  %v1346_v53 = vpack.c.bf16 %v947_v50, %v946_v48  ;;  %v950_v55 = vld [vmem:[#allocation2 + $0x40] sm:$0xff]  ;;  %v951_v56 = vld [vmem:[#allocation2 + $0x1f8] sm:$0xff] }
 0x19f   :  { %1184 = vst [vmem:[#allocation11 + $0x70] sm:$0xff] %v1344_v45  ;;  %v1347_v54 = vpack.c.bf16 %v949_v52, %v948_v51  ;;  %v952_v57 = vld [vmem:[#allocation2 + $0x20] sm:$0xff]  ;;  %1185 = vst [vmem:[#allocation11 + $0x78] sm:$0xff] %v1345_v49  ;;  %v1348_v58 = vpack.c.bf16 %v951_v56, %v950_v55  ;;  %v953_v59 = vld [vmem:[#allocation2 + $0x128] sm:$0xff] }
 0x1a0   :  { %v954_v60 = vld [vmem:[#allocation2 + $0x1a0] sm:$0xff]  ;;  %v955_v61 = vld [vmem:[#allocation2 + $0x1f0] sm:$0xff]  ;;  %1186 = vst [vmem:[#allocation11 + $0x80] sm:$0xff] %v1346_v53  ;;  %v1349_v62 = vpack.c.bf16 %v953_v59, %v952_v57  ;;  %v956_v0 = vld [vmem:[#allocation2 + $0xe8] sm:$0xff] }
 0x1a1   :  { %1187 = vst [vmem:[#allocation11 + $0x88] sm:$0xff] %v1347_v54  ;;  %v1350_v63 = vpack.c.bf16 %v955_v61, %v954_v60  ;;  %v957_v1 = vld [vmem:[#allocation2 + $0x78] sm:$0xff]  ;;  %v958_v2 = vld [vmem:[#allocation2 + $0x70] sm:$0xff]  ;;  %1188 = vst [vmem:[#allocation11 + $0x90] sm:$0xff] %v1348_v58 }
 0x1a2   :  { %v1351_v3 = vpack.c.bf16 %v957_v1, %v956_v0  ;;  %v959_v4 = vld [vmem:[#allocation2 + $0x90] sm:$0xff]  ;;  %v960_v5 = vld [vmem:[#allocation2 + $0x1d8] sm:$0xff]  ;;  %1189 = vst [vmem:[#allocation11 + $0x98] sm:$0xff] %v1349_v62  ;;  %v963_v10 = vld [vmem:[#allocation2 + $0x88] sm:$0xff] }
 0x1a3   :  { %v961_v6 = vld [vmem:[#allocation2 + $0xd0] sm:$0xff]  ;;  %1190 = vst [vmem:[#allocation11 + $0xa0] sm:$0xff] %v1350_v63  ;;  %v1352_v7 = vpack.c.bf16 %v959_v4, %v958_v2  ;;  %v962_v9 = vld [vmem:[#allocation2 + $0xb8] sm:$0xff]  ;;  %v964_v11 = vld [vmem:[#allocation2 + $0xa8] sm:$0xff] }
 0x1a4   :  { %v1353_v8 = vpack.c.bf16 %v961_v6, %v960_v5  ;;  %1191 = vst [vmem:[#allocation11 + $0xa8] sm:$0xff] %v1351_v3  ;;  %v1354_v12 = vpack.c.bf16 %v963_v10, %v962_v9  ;;  %v965_v13 = vld [vmem:[#allocation2 + $0x1c8] sm:$0xff]  ;;  %v966_v14 = vld [vmem:[#allocation2 + $0x170] sm:$0xff]  ;;  %v967_v15 = vld [vmem:[#allocation2 + $0x178] sm:$0xff] }
 0x1a5   :  { %1192 = vst [vmem:[#allocation11 + $0xb0] sm:$0xff] %v1352_v7  ;;  %v1355_v16 = vpack.c.bf16 %v965_v13, %v964_v11  ;;  %v1356_v17 = vpack.c.bf16 %v967_v15, %v966_v14  ;;  %v968_v18 = vld [vmem:[#allocation2 + $0x68] sm:$0xff]  ;;  %v969_v19 = vld [vmem:[#allocation2 + $0x190] sm:$0xff]  ;;  %v970_v20 = vld [vmem:[#allocation2 + $0x198] sm:$0xff] }
 0x1a6   :  { %1193 = vst [vmem:[#allocation11 + $0xb8] sm:$0xff] %v1353_v8  ;;  %1194 = vst [vmem:[#allocation11 + $0xc0] sm:$0xff] %v1354_v12  ;;  %v1357_v21 = vpack.c.bf16 %v969_v19, %v968_v18  ;;  %v971_v22 = vld [vmem:[#allocation2 + $0x38] sm:$0xff]  ;;  %v972_v23 = vld [vmem:[#allocation2 + $0xc0] sm:$0xff] }
 0x1a7   :  { %v973_v24 = vld [vmem:[#allocation2 + $0x1c0] sm:$0xff]  ;;  %1195 = vst [vmem:[#allocation11 + $0xc8] sm:$0xff] %v1355_v16  ;;  %1196 = vst [vmem:[#allocation11 + $0xd0] sm:$0xff] %v1356_v17  ;;  %v1358_v25 = vpack.c.bf16 %v971_v22, %v970_v20  ;;  %v974_v27 = vld [vmem:[#allocation2 + $0x158] sm:$0xff] }
 0x1a8   :  { %v1359_v26 = vpack.c.bf16 %v973_v24, %v972_v23  ;;  %v975_v28 = vld [vmem:[#allocation2 + $0x10] sm:$0xff]  ;;  %v976_v29 = vld [vmem:[#allocation2 + $0x58] sm:$0xff]  ;;  %1197 = vst [vmem:[#allocation11 + $0xd8] sm:$0xff] %v1357_v21  ;;  %v977_v31 = vld [vmem:[#allocation2 + $0xa0] sm:$0xff] }
 0x1a9   :  { %v1360_v30 = vpack.c.bf16 %v975_v28, %v974_v27  ;;  %1198 = vst [vmem:[#allocation11 + $0xe0] sm:$0xff] %v1358_v25  ;;  %v1361_v32 = vpack.c.bf16 %v977_v31, %v976_v29 }
 0x1aa   :  { %1199 = vst [vmem:[#allocation11 + $0xe8] sm:$0xff] %v1359_v26 }
 0x1ab   :  { %1200 = vst [vmem:[#allocation11 + $0xf0] sm:$0xff] %v1360_v30  ;;  %1201 = vst [vmem:[#allocation11 + $0xf8] sm:$0xff] %v1361_v32 }
 0x1ac   :  { %1551 = shalt.err (!%p1548_p11)
}
 0x1ad   :  { %1213 = dma.vmem_to_hbm [thread:$0]  %s1208_s20, 4096, %s1704_s4, [#allocation8], %s1567_s0, %s1567_s0, %s1568_s7  }
 0x1ae   :  { %1564 = dma.done.wait [#allocation8], 4096  }
 0x1af   :  { %1565 = vsyncadd [#allocation8], 4294963200 }
 0x1b0   :  { %1217 = vsyncpa [#allocation7], 1 }
 0x1b1   :  { %1218 = vsyncpa [#allocation10], 1 }
 0x1b2   :  { %1219 = vsyncpa [#allocation8], 1 }

</bundles_post_ra>
